<compile_context>
chip_gen: v7x
topology: tpu7x:2x2x1
jax: 0.10.0
libtpu: 0.0.40
codegen_flags: <defaults>
</compile_context>

<pallas_src>
import jax
import jax.numpy as jnp
from jax.experimental import pallas as pl
from jax.experimental.pallas import tpu as pltpu

# ---- small, module-consistent sizes (scaled-down from 300/768/768/300/1200)
BATCH = 8
STUDENT_HIDDEN = 32   # student_hidden_size
KC_EMB = 64           # kc_emb_size
ACTION = 64           # action_size
HIDDEN = 32           # hidden_size
UP_PROJ = 128         # up_projection_size

OBS_DIM = STUDENT_HIDDEN + KC_EMB      # 96
LANES = 128                            # packed layer width / output row width
BATCH_TILE = 128                       # rows per grid step (== LANES, see note)

W1_OBS_ROWS = OBS_DIM                  # 96
W1_ACT_ROWS = ACTION                   # 64
W2_OFF = W1_OBS_ROWS + W1_ACT_ROWS     # 160
W3_OFF = W2_OFF + LANES                # 288
W_SLAB_ROWS = W3_OFF + LANES           # 416

MATMUL_DTYPE = jnp.bfloat16            # MXU operand dtype (f32 accumulate)

# Demo sizes must fit a single 128-lane tile per layer. The full-size module
# (300/768/768/300/1200) would pad each segment to multiples of 128 and add a
# K/N grid; same packing idea applies.
assert 3 * HIDDEN <= LANES and 2 * HIDDEN <= LANES and UP_PROJ == LANES
# Lane-packed output row must be exactly the batch tile.
assert BATCH_TILE == LANES
# Weight-slab row offsets must sit on bf16 (16,128) tile boundaries.
assert all(o % 16 == 0 for o in (W1_OBS_ROWS, W2_OFF, W3_OFF, W_SLAB_ROWS))


def _round_up(x, m):
  return (x + m - 1) // m * m


def _kc_critic_kernel(obs_ref, act_ref, w_ref, b_ref, out_ref):
  """obs_ref: (bt, 96) f32, act_ref: (bt, 64) f32, w_ref: (416, 128) bf16,
  b_ref: (8, 128) f32, out_ref: (1, 1, bt) f32 lane-packed result row."""
  f32 = jnp.float32
  mm = MATMUL_DTYPE
  bt = out_ref.shape[-1]

  # bf16 casts happen in-kernel (VPU); inputs stream straight from HBM as f32.
  obs = obs_ref[...].astype(mm)                       # (bt, 96)
  act = act_ref[...].astype(mm)                       # (bt, 64)

  # Static, lane-full, tile-aligned slices of the packed weight slab.
  w1_obs = w_ref[0:W1_OBS_ROWS, :]                    # layer 1, obs half
  w1_act = w_ref[W1_OBS_ROWS:W2_OFF, :]               # layer 1, action half
  w2 = w_ref[W2_OFF:W3_OFF, :]                        # concat_fc + identity
  w3 = w_ref[W3_OFF:W_SLAB_ROWS, :]                   # fc1

  b1 = b_ref[0:1, :]                                  # [b_hs | b_kc | b_act | 0]
  b2 = b_ref[1:2, :]                                  # [b_cat | 0]
  b3 = b_ref[2:3, :]                                  # b_fc1
  w_out = b_ref[3:4, :].astype(mm)                    # output weight row (1,128)
  b_out = b_ref[4:5, :]                               # output bias, all lanes

  # Layer 1: two accumulated MXU pushes (K=96 and K=64), result lanes are
  # [h1 | h2 | a | 0].  Both K chunks fit a 128-deep MXU pass (v5e friendly).
  y1 = jnp.dot(obs, w1_obs, preferred_element_type=f32)
  y1 = y1 + jnp.dot(act, w1_act, preferred_element_type=f32)
  y1 = jnp.maximum(y1 + b1, 0.0)                      # (bt, 128)

  # Layer 2: [c | a | 0]  (identity block carries `a`; relu(a) == a).
  y2 = jnp.maximum(
      jnp.dot(y1.astype(mm), w2, preferred_element_type=f32) + b2, 0.0)
  # Layer 3: fc1 on the contiguous [c | a] lanes -> (bt, 128).
  y3 = jnp.maximum(
      jnp.dot(y2.astype(mm), w3, preferred_element_type=f32) + b3, 0.0)

  # Output layer (128 -> 1) on the MXU as a trans_b matmul so the result is
  # already lane-packed: (1,128) @ (bt,128)^T -> (1, bt).  No cross-lane
  # reduce, no broadcast writeback, no masked width-1 store.
  out_row = jax.lax.dot_general(
      w_out, y3.astype(mm),
      dimension_numbers=(((1,), (1,)), ((), ())),
      preferred_element_type=f32)                     # (1, bt)
  out_ref[...] = (out_row + b_out).reshape(1, 1, bt)


def kc_critic_forward(obs, actions, packed):
  """obs: [B, STUDENT_HIDDEN + KC_EMB] f32, actions: [B, ACTION] f32 -> [B]."""
  obs = obs.astype(jnp.float32)
  actions = actions.astype(jnp.float32)
  B = obs.shape[0]

  bt = BATCH_TILE
  b_pad = _round_up(B, bt)
  if b_pad != B:
    # Only needed when B is not a tile multiple (rows are independent; the
    # padded garbage rows are sliced off below).
    obs = jnp.pad(obs, ((0, b_pad - B), (0, 0)))
    actions = jnp.pad(actions, ((0, b_pad - B), (0, 0)))
  num_tiles = b_pad // bt

  flops = 2 * b_pad * (OBS_DIM * LANES + ACTION * LANES
                       + 2 * LANES * LANES + LANES)
  bytes_accessed = (b_pad * (OBS_DIM + ACTION) * 4       # f32 inputs
                    + b_pad * 4                          # lane-packed output
                    + W_SLAB_ROWS * LANES * 2            # bf16 weight slab
                    + 8 * LANES * 4)                     # f32 bias slab

  out = pl.pallas_call(
      _kc_critic_kernel,
      out_shape=jax.ShapeDtypeStruct((num_tiles, 1, bt), jnp.float32),
      grid=(num_tiles,),
      in_specs=[
          pl.BlockSpec((bt, OBS_DIM), lambda i: (i, 0)),            # obs
          pl.BlockSpec((bt, ACTION), lambda i: (i, 0)),             # actions
          pl.BlockSpec((W_SLAB_ROWS, LANES), lambda i: (0, 0)),     # weights
          pl.BlockSpec((8, LANES), lambda i: (0, 0)),               # biases
      ],
      out_specs=pl.BlockSpec((1, 1, bt), lambda i: (i, 0, 0)),
      compiler_params=pltpu.CompilerParams(
          dimension_semantics=("parallel",)),
      cost_estimate=pl.CostEstimate(
          flops=flops, transcendentals=0, bytes_accessed=bytes_accessed),
  )(obs, actions, packed["w_slab"], packed["b_slab"])

  # (num_tiles, 1, bt) -> flat [b_pad] (free reshape), slice real rows.
  return out.reshape(-1)[:B]


def init_params(key):
  """Deterministic synthetic parameters (shapes per KCCritic.__init__),
  stored as [in_features, out_features] (transpose of torch's weight)."""
  keys = jax.random.split(key, 12)

  def w(k, shape):
    return (jax.random.normal(k, shape, dtype=jnp.float32)
            / jnp.sqrt(jnp.float32(shape[0])))

  return dict(
      w_hs=w(keys[0], (STUDENT_HIDDEN, HIDDEN)),
      b_hs=w(keys[1], (1, HIDDEN)),
      w_kc=w(keys[2], (KC_EMB, HIDDEN)),
      b_kc=w(keys[3], (1, HIDDEN)),
      w_cat=w(keys[4], (2 * HIDDEN, HIDDEN)),
      b_cat=w(keys[5], (1, HIDDEN)),
      w_act=w(keys[6], (ACTION, HIDDEN)),
      b_act=w(keys[7], (1, HIDDEN)),
      w_fc1=w(keys[8], (2 * HIDDEN, UP_PROJ)),
      b_fc1=w(keys[9], (1, UP_PROJ)),
      w_out=w(keys[10], (UP_PROJ, 1)),
      b_out=w(keys[11], (1, 1)),
  )


def pack_params(p):
  """Pack all weights into one bf16 slab and all biases/aux into one f32 slab."""
  H, SH, KC, UP = HIDDEN, STUDENT_HIDDEN, KC_EMB, UP_PROJ
  f32 = jnp.float32

  # Layer 1, obs half: block-diagonal [w_hs -> cols 0:32 ; w_kc -> cols 32:64].
  w1_obs = jnp.zeros((W1_OBS_ROWS, LANES), f32)
  w1_obs = w1_obs.at[:SH, :H].set(p["w_hs"])
  w1_obs = w1_obs.at[SH:SH + KC, H:2 * H].set(p["w_kc"])

  # Layer 1, action half: w_act -> cols 64:96.
  w1_act = jnp.zeros((W1_ACT_ROWS, LANES), f32)
  w1_act = w1_act.at[:, 2 * H:3 * H].set(p["w_act"])

  # Layer 2: [[w_cat -> c], [identity carries a]] -> [c | a | 0].
  w2 = jnp.zeros((LANES, LANES), f32)
  w2 = w2.at[:2 * H, :H].set(p["w_cat"])
  w2 = w2.at[2 * H:3 * H, H:2 * H].set(jnp.eye(H, dtype=f32))

  # Layer 3: fc1 on the contiguous [c | a] lanes.
  w3 = jnp.zeros((LANES, LANES), f32)
  w3 = w3.at[:2 * H, :UP].set(p["w_fc1"])

  w_slab = jnp.concatenate([w1_obs, w1_act, w2, w3],
                           axis=0).astype(MATMUL_DTYPE)

  b_slab = jnp.zeros((8, LANES), f32)
  b_slab = b_slab.at[0, :H].set(p["b_hs"][0])
  b_slab = b_slab.at[0, H:2 * H].set(p["b_kc"][0])
  b_slab = b_slab.at[0, 2 * H:3 * H].set(p["b_act"][0])
  b_slab = b_slab.at[1, :H].set(p["b_cat"][0])
  b_slab = b_slab.at[2, :UP].set(p["b_fc1"][0])
  b_slab = b_slab.at[3, :UP].set(p["w_out"][:, 0])     # output weights as a row
  b_slab = b_slab.at[4, :].set(p["b_out"][0, 0])       # output bias, all lanes
  return {"w_slab": w_slab, "b_slab": b_slab}


def _reference_forward(obs, actions, p):
  """Pure-JAX reference matching the torch forward; mirrors the kernel's
  bf16-operand / f32-accumulate MXU precision on every layer."""
  f32 = jnp.float32
  mm = MATMUL_DTYPE

  def lin(x, w, b):
    return jnp.dot(x.astype(mm), w.astype(mm),
                   preferred_element_type=f32) + b

  hs = obs[:, :STUDENT_HIDDEN]
  kc = obs[:, STUDENT_HIDDEN:]
  h1 = jax.nn.relu(lin(hs, p["w_hs"], p["b_hs"]))
  h2 = jax.nn.relu(lin(kc, p["w_kc"], p["b_kc"]))
  c = jax.nn.relu(
      lin(jnp.concatenate([h1, h2], axis=1), p["w_cat"], p["b_cat"]))
  a = jax.nn.relu(lin(actions, p["w_act"], p["b_act"]))
  x = jax.nn.relu(
      lin(jnp.concatenate([c, a], axis=1), p["w_fc1"], p["b_fc1"]))
  return lin(x, p["w_out"], p["b_out"])[:, 0]


if __name__ == "__main__":
  key = jax.random.PRNGKey(0)
  k_obs, k_act, k_par = jax.random.split(key, 3)

  obs = jax.random.normal(k_obs, (BATCH, STUDENT_HIDDEN + KC_EMB),
                          dtype=jnp.float32)
  actions = jax.random.normal(k_act, (BATCH, ACTION), dtype=jnp.float32)
  params = init_params(k_par)
  packed = pack_params(params)   # one-time weight packing ("load" step)

  out = jax.block_until_ready(kc_critic_forward(obs, actions, packed))
  ref = jax.block_until_ready(_reference_forward(obs, actions, params))

  assert out.shape == (BATCH,), out.shape
  assert jnp.allclose(out, ref, atol=5e-3, rtol=5e-3), (out, ref)
  # TODO(synk): the torch module's optional CSV logging (log_path) is host
  # file I/O and has no Pallas equivalent; omitted.
  print("KERNEL_OK")
</pallas_src>

<mosaic_0001>
module attributes {stable_mosaic.version = 11 : i64} {
  func.func @_kc_critic_kernel(%arg0: i32, %arg1: memref<128x96xf32, #tpu.memory_space<vmem>>, %arg2: memref<128x64xf32, #tpu.memory_space<vmem>>, %arg3: memref<416x128xbf16, #tpu.memory_space<vmem>>, %arg4: memref<8x128xf32, #tpu.memory_space<vmem>>, %arg5: memref<1x1x128xf32, #tpu.memory_space<vmem>>) attributes {dimension_semantics = [#tpu.dimension_semantics<parallel>], iteration_bounds = array<i64: 1>, scalar_prefetch = 0 : i64, scratch_operands = 0 : i64, tpu.core_type = #tpu.core_type<tc>, window_params = [{transform_indices = @transform_0, window_bounds = array<i64: 128, 96>}, {transform_indices = @transform_1, window_bounds = array<i64: 128, 64>}, {pipeline_mode = #tpu.pipeline_mode<synchronous>, transform_indices = @transform_2, window_bounds = array<i64: 416, 128>}, {pipeline_mode = #tpu.pipeline_mode<synchronous>, transform_indices = @transform_3, window_bounds = array<i64: 8, 128>}, {transform_indices = @transform_4, window_bounds = array<i64: 1, 1, 128>}]} {
    %c0 = arith.constant 0 : index
    %c0_0 = arith.constant 0 : index
    %0 = vector.load %arg1[%c0, %c0_0] : memref<128x96xf32, #tpu.memory_space<vmem>>, vector<128x96xf32>
    %1 = arith.truncf %0 : vector<128x96xf32> to vector<128x96xbf16>
    %c0_1 = arith.constant 0 : index
    %c0_2 = arith.constant 0 : index
    %2 = vector.load %arg2[%c0_1, %c0_2] : memref<128x64xf32, #tpu.memory_space<vmem>>, vector<128x64xf32>
    %3 = arith.truncf %2 : vector<128x64xf32> to vector<128x64xbf16>
    %c0_3 = arith.constant 0 : index
    %c0_4 = arith.constant 0 : index
    %4 = vector.load %arg3[%c0_3, %c0_4] : memref<416x128xbf16, #tpu.memory_space<vmem>>, vector<96x128xbf16>
    %c96 = arith.constant 96 : index
    %c0_5 = arith.constant 0 : index
    %5 = vector.load %arg3[%c96, %c0_5] : memref<416x128xbf16, #tpu.memory_space<vmem>>, vector<64x128xbf16>
    %c160 = arith.constant 160 : index
    %c0_6 = arith.constant 0 : index
    %6 = vector.load %arg3[%c160, %c0_6] : memref<416x128xbf16, #tpu.memory_space<vmem>>, vector<128x128xbf16>
    %c288 = arith.constant 288 : index
    %c0_7 = arith.constant 0 : index
    %7 = vector.load %arg3[%c288, %c0_7] : memref<416x128xbf16, #tpu.memory_space<vmem>>, vector<128x128xbf16>
    %c0_8 = arith.constant 0 : index
    %c0_9 = arith.constant 0 : index
    %8 = vector.load %arg4[%c0_8, %c0_9] : memref<8x128xf32, #tpu.memory_space<vmem>>, vector<1x128xf32>
    %c1 = arith.constant 1 : index
    %c0_10 = arith.constant 0 : index
    %9 = vector.load %arg4[%c1, %c0_10] : memref<8x128xf32, #tpu.memory_space<vmem>>, vector<1x128xf32>
    %c2 = arith.constant 2 : index
    %c0_11 = arith.constant 0 : index
    %10 = vector.load %arg4[%c2, %c0_11] : memref<8x128xf32, #tpu.memory_space<vmem>>, vector<1x128xf32>
    %c3 = arith.constant 3 : index
    %c0_12 = arith.constant 0 : index
    %11 = vector.load %arg4[%c3, %c0_12] : memref<8x128xf32, #tpu.memory_space<vmem>>, vector<1x128xf32>
    %12 = arith.truncf %11 : vector<1x128xf32> to vector<1x128xbf16>
    %c4 = arith.constant 4 : index
    %c0_13 = arith.constant 0 : index
    %13 = vector.load %arg4[%c4, %c0_13] : memref<8x128xf32, #tpu.memory_space<vmem>>, vector<1x128xf32>
    %cst = arith.constant dense<0.000000e+00> : vector<128x128xf32>
    %14 = tpu.matmul %1, %4, %cst {dimension_numbers = #tpu.dot_dimension_numbers<[1], [0], [0], [1], [0, 0, 1, 1], [], []>} : vector<128x96xbf16>, vector<96x128xbf16>, vector<128x128xf32> -> vector<128x128xf32>
    %cst_14 = arith.constant dense<0.000000e+00> : vector<128x128xf32>
    %15 = tpu.matmul %3, %5, %cst_14 {dimension_numbers = #tpu.dot_dimension_numbers<[1], [0], [0], [1], [0, 0, 1, 1], [], []>} : vector<128x64xbf16>, vector<64x128xbf16>, vector<128x128xf32> -> vector<128x128xf32>
    %16 = arith.addf %14, %15 : vector<128x128xf32>
    %17 = vector.broadcast %8 : vector<1x128xf32> to vector<128x128xf32>
    %18 = arith.addf %16, %17 : vector<128x128xf32>
    %cst_15 = arith.constant 0.000000e+00 : f32
    %19 = vector.broadcast %cst_15 : f32 to vector<128x128xf32>
    %20 = arith.maximumf %18, %19 : vector<128x128xf32>
    %21 = arith.truncf %20 : vector<128x128xf32> to vector<128x128xbf16>
    %cst_16 = arith.constant dense<0.000000e+00> : vector<128x128xf32>
    %22 = tpu.matmul %21, %6, %cst_16 {dimension_numbers = #tpu.dot_dimension_numbers<[1], [0], [0], [1], [0, 0, 1, 1], [], []>} : vector<128x128xbf16>, vector<128x128xbf16>, vector<128x128xf32> -> vector<128x128xf32>
    %23 = vector.broadcast %9 : vector<1x128xf32> to vector<128x128xf32>
    %24 = arith.addf %22, %23 : vector<128x128xf32>
    %cst_17 = arith.constant 0.000000e+00 : f32
    %25 = vector.broadcast %cst_17 : f32 to vector<128x128xf32>
    %26 = arith.maximumf %24, %25 : vector<128x128xf32>
    %27 = arith.truncf %26 : vector<128x128xf32> to vector<128x128xbf16>
    %cst_18 = arith.constant dense<0.000000e+00> : vector<128x128xf32>
    %28 = tpu.matmul %27, %7, %cst_18 {dimension_numbers = #tpu.dot_dimension_numbers<[1], [0], [0], [1], [0, 0, 1, 1], [], []>} : vector<128x128xbf16>, vector<128x128xbf16>, vector<128x128xf32> -> vector<128x128xf32>
    %29 = vector.broadcast %10 : vector<1x128xf32> to vector<128x128xf32>
    %30 = arith.addf %28, %29 : vector<128x128xf32>
    %cst_19 = arith.constant 0.000000e+00 : f32
    %31 = vector.broadcast %cst_19 : f32 to vector<128x128xf32>
    %32 = arith.maximumf %30, %31 : vector<128x128xf32>
    %33 = arith.truncf %32 : vector<128x128xf32> to vector<128x128xbf16>
    %cst_20 = arith.constant dense<0.000000e+00> : vector<1x128xf32>
    %34 = tpu.matmul %12, %33, %cst_20 {dimension_numbers = #tpu.dot_dimension_numbers<[1], [1], [0], [0], [0, 0, 1, 0], [], []>} : vector<1x128xbf16>, vector<128x128xbf16>, vector<1x128xf32> -> vector<1x128xf32>
    %35 = arith.addf %34, %13 : vector<1x128xf32>
    %36 = vector.shape_cast %35 : vector<1x128xf32> to vector<1x1x128xf32>
    %c0_21 = arith.constant 0 : index
    %c0_22 = arith.constant 0 : index
    %c0_23 = arith.constant 0 : index
    %37 = vector.load %arg5[%c0_21, %c0_22, %c0_23] : memref<1x1x128xf32, #tpu.memory_space<vmem>>, vector<1x1x128xf32>
    tpu.vector_store %arg5[%c0_21, %c0_22, %c0_23], %36 {strides = array<i32>} : memref<1x1x128xf32, #tpu.memory_space<vmem>>, vector<1x1x128xf32>,
    return
  }
  func.func @transform_0(%arg0: i32) -> (i32, i32) {
    %c0_i32 = arith.constant 0 : i32
    %c0_i32_0 = arith.constant 0 : i32
    return %arg0, %c0_i32 : i32, i32
  }
  func.func @transform_1(%arg0: i32) -> (i32, i32) {
    %c0_i32 = arith.constant 0 : i32
    %c0_i32_0 = arith.constant 0 : i32
    return %arg0, %c0_i32 : i32, i32
  }
  func.func @transform_2(%arg0: i32) -> (i32, i32) {
    %c0_i32 = arith.constant 0 : i32
    %c0_i32_0 = arith.constant 0 : i32
    %c0_i32_1 = arith.constant 0 : i32
    return %c0_i32, %c0_i32_0 : i32, i32
  }
  func.func @transform_3(%arg0: i32) -> (i32, i32) {
    %c0_i32 = arith.constant 0 : i32
    %c0_i32_0 = arith.constant 0 : i32
    %c0_i32_1 = arith.constant 0 : i32
    return %c0_i32, %c0_i32_0 : i32, i32
  }
  func.func @transform_4(%arg0: i32) -> (i32, i32, i32) {
    %c0_i32 = arith.constant 0 : i32
    %c0_i32_0 = arith.constant 0 : i32
    %c0_i32_1 = arith.constant 0 : i32
    return %arg0, %c0_i32, %c0_i32_0 : i32, i32, i32
  }
}

</mosaic_0001>

<bundles_post_ra>
// kernel: tpu_custom_call.1
= control target key start
LH: loop header
LB: loop body
LE: loop exit
PB: predicated region body
PF: predicated region fallthrough
CT: control target
= control target key end

     0   :  { %vm149_vm0 = vcmask 523264   ;;  %vm307_vm1 = vcmask 785408   ;;  %s1463_s0 = inlined_call_operand.vmem [shape: f32[128,96], index: 0, kind: input, shape index: {}]   ;;  %s1464_s1 = inlined_call_operand.vmem [shape: f32[128,64], index: 1, kind: input, shape index: {}]   ;;  %s1465_s2 = inlined_call_operand.vmem [shape: bf16[416,128], index: 2, kind: input, shape index: {}]   ;;  %s1466_s3 = inlined_call_operand.vmem [shape: f32[8,128], index: 3, kind: input, shape index: {}]   ;;  %s1467_s4 = inlined_call_operand.hbm [shape: f32[1,1,128], index: 4, kind: output, shape index: {}]  }
   0x1   :  { %v1141_v0 = vld [vmem:[%s1465_s2] sm:$0xff]   ;;  %v1142_v1 = vld [vmem:[%s1465_s2 + $0x8] sm:$0xff]   ;;  %v1143_v2 = vld [vmem:[%s1465_s2 + $0x30] sm:$0xff]  }
   0x2   :  { %1010 = vmatprep.subr.bf16.mxu0 %v1141_v0  ;;  %v1144_v3 = vld [vmem:[%s1465_s2 + $0x10] sm:$0xff]   ;;  %986 = vmatprep.subr.bf16.mxu1 %v1143_v2  ;;  %v1145_v4 = vld [vmem:[%s1465_s2 + $0x38] sm:$0xff]   ;;  %v1147_v5 = vld [vmem:[%s1465_s2 + $0x40] sm:$0xff]  }
   0x3   :  { %1011 = vmatpush3.bf16.msra.mxu0 %v1141_v0  ;;  %987 = vmatpush3.bf16.msra.mxu1 %v1143_v2  ;;  %v1146_v6 = vld [vmem:[%s1465_s2 + $0x18] sm:$0xff]   ;;  %v43_v7 = vld [vmem:[%s1464_s1] sm:$0xff]  ;;  %v44_v8 = vld [vmem:[%s1464_s1 + $0x8] sm:$0xff] }
   0x4   :  { %1012 = vmatprep.subr.bf16.mxu0 %v1142_v1  ;;  %988 = vmatprep.subr.bf16.mxu1 %v1145_v4  ;;  %v1149_v9 = vld [vmem:[%s1465_s2 + $0x48] sm:$0xff]   ;;  %v59_v10 = vpack.c.bf16 %v44_v8, %v43_v7  ;;  %v19_v11 = vld [vmem:[%s1463_s0] sm:$0xff]  ;;  %v45_v15 = vld [vmem:[%s1464_s1 + $0x10] sm:$0xff] }
   0x5   :  { %v20_v12 = vld [vmem:[%s1463_s0 + $0x8] sm:$0xff]  ;;  %v1148_v13 = vld [vmem:[%s1465_s2 + $0x20] sm:$0xff]   ;;  %v46_v16 = vld [vmem:[%s1464_s1 + $0x18] sm:$0xff] }
   0x6   :  { %994 = vmatprep.mubr.msk.bf16.mxu1 %vm149_vm0, %v59_v10  ;;  %v35_v14 = vpack.c.bf16 %v20_v12, %v19_v11  ;;  %v47_v17 = vld [vmem:[%s1464_s1 + $0x20] sm:$0xff]  ;;  %v48_v18 = vld [vmem:[%s1464_s1 + $0x28] sm:$0xff]  ;;  %v60_v20 = vpack.c.bf16 %v46_v16, %v45_v15  ;;  %v21_v22 = vld [vmem:[%s1463_s0 + $0x10] sm:$0xff] }
   0x7   :  { %1013 = vmatpush3.bf16.msra.mxu0 %v1142_v1  ;;  %989 = vmatpush3.bf16.msra.mxu1 %v1145_v4  ;;  %v1150_v19 = vld [vmem:[%s1465_s2 + $0x28] sm:$0xff]   ;;  %v61_v21 = vpack.c.bf16 %v48_v18, %v47_v17  ;;  %v22_v23 = vld [vmem:[%s1463_s0 + $0x18] sm:$0xff]  ;;  %v23_v24 = vld [vmem:[%s1463_s0 + $0x20] sm:$0xff] }
   0x8   :  { %1014 = vmatprep.subr.bf16.mxu0 %v1144_v3  ;;  %990 = vmatprep.subr.bf16.mxu1 %v1147_v5  ;;  %v24_v25 = vld [vmem:[%s1463_s0 + $0x28] sm:$0xff]  ;;  %v49_v26 = vld [vmem:[%s1464_s1 + $0x30] sm:$0xff]  ;;  %v50_v27 = vld [vmem:[%s1464_s1 + $0x38] sm:$0xff]  ;;  %v36_v31 = vpack.c.bf16 %v22_v23, %v21_v22 }
   0x9   :  { %1022 = vmatprep.mubr.msk.bf16.mxu0 %vm307_vm1, %v35_v14  ;;  %v51_v28 = vld [vmem:[%s1464_s1 + $0x40] sm:$0xff]  ;;  %v52_v29 = vld [vmem:[%s1464_s1 + $0x48] sm:$0xff]  ;;  %v1151_v30 = vld [vmem:[%s1465_s2 + $0x50] sm:$0xff]   ;;  %v37_v33 = vpack.c.bf16 %v24_v25, %v23_v24  ;;  %v62_v34 = vpack.c.bf16 %v50_v27, %v49_v26 }
   0xa   :  { %v1152_v32 = vld [vmem:[%s1465_s2 + $0x58] sm:$0xff]   ;;  %v25_v35 = vld [vmem:[%s1463_s0 + $0x30] sm:$0xff]  ;;  %v63_v37 = vpack.c.bf16 %v52_v29, %v51_v28  ;;  %v1153_v38 = vld [vmem:[%s1465_s2 + $0x60] sm:$0xff]  }
   0xb   :  { %1015 = vmatpush3.bf16.msra.mxu0 %v1144_v3  ;;  %991 = vmatpush3.bf16.msra.mxu1 %v1147_v5  ;;  %v26_v36 = vld [vmem:[%s1463_s0 + $0x38] sm:$0xff]  ;;  %v27_v39 = vld [vmem:[%s1463_s0 + $0x40] sm:$0xff]  ;;  %v28_v40 = vld [vmem:[%s1463_s0 + $0x48] sm:$0xff] }
   0xc   :  { %1016 = vmatprep.subr.bf16.mxu0 %v1146_v6  ;;  %992 = vmatprep.subr.bf16.mxu1 %v1149_v9  ;;  %v53_v41 = vld [vmem:[%s1464_s1 + $0x50] sm:$0xff]  ;;  %v54_v42 = vld [vmem:[%s1464_s1 + $0x58] sm:$0xff]  ;;  %v55_v43 = vld [vmem:[%s1464_s1 + $0x60] sm:$0xff]  ;;  %v38_v46 = vpack.c.bf16 %v26_v36, %v25_v35  ;;  %v39_v47 = vpack.c.bf16 %v28_v40, %v27_v39 }
   0xd   :  { %v56_v44 = vld [vmem:[%s1464_s1 + $0x68] sm:$0xff]  ;;  %v64_v48 = vpack.c.bf16 %v54_v42, %v53_v41 }
   0xe   :  { %v1154_v45 = vld [vmem:[%s1465_s2 + $0x68] sm:$0xff]   ;;  %v65_v49 = vpack.c.bf16 %v56_v44, %v55_v43 }
   0xf   :  { %1017 = vmatpush3.bf16.msra.mxu0 %v1146_v6  ;;  %993 = vmatpush3.bf16.msra.mxu1 %v1149_v9 }
  0x10   :  { %1018 = vmatprep.subr.bf16.mxu0 %v1148_v13  ;;  %1038 = vmatprep.subr.bf16.mxu1 %v1151_v30 }
  0x12   :  { %995 = vmatmul.mubr.msk.bf16.vlgmr.msra.gmra.mrb[0].mxu1 %vm149_vm0, %v60_v20 }
  0x13   :  { %1019 = vmatpush3.bf16.msra.mxu0 %v1148_v13  ;;  %998 = vmatprep.mubr.msk.bf16.mxu1 %vm149_vm0, %v61_v21 }
  0x14   :  { %1020 = vmatprep.subr.bf16.mxu0 %v1150_v19  ;;  %1039 = vmatpush3.bf16.msra.mxu1 %v1151_v30 }
  0x15   :  { %1040 = vmatprep.subr.bf16.mxu1 %v1152_v32 }
  0x17   :  { %1021 = vmatpush3.bf16.msra.mxu0 %v1150_v19 }
  0x18   :  { %1041 = vmatpush3.bf16.msra.mxu1 %v1152_v32 }
  0x19   :  { %1042 = vmatprep.subr.bf16.mxu1 %v1153_v38 }
  0x1a   :  { %1023 = vmatmul.mubr.msk.bf16.vlgmr.msra.gmra.mrb[0].mxu0 %vm307_vm1, %v36_v31  ;;  %999 = vmatmul.mubr.msk.bf16.gmra.mrb[4].mxu1 %vm149_vm0, %v62_v34 }
  0x1b   :  { %1026 = vmatprep.mubr.msk.bf16.mxu0 %vm307_vm1, %v37_v33  ;;  %1002 = vmatprep.mubr.msk.bf16.mxu1 %vm149_vm0, %v63_v37 }
  0x1c   :  { %1043 = vmatpush3.bf16.msra.mxu1 %v1153_v38 }
  0x1d   :  { %9 = vsyncpa [#allocation3], 0  ;;  %1044 = vmatprep.subr.bf16.mxu1 %v1154_v45  ;;  %v1155_v50 = vld [vmem:[%s1465_s2 + $0x70] sm:$0xff]   ;;  %v30_v52 = vld [vmem:[%s1463_s0 + $0x58] sm:$0xff]  ;;  %vm1192_vm2 = vmmov 0   ;;  %s1193_s7 = smov [#allocation2]  }
  0x1e   :  { %v29_v51 = vld [vmem:[%s1463_s0 + $0x50] sm:$0xff]  ;;  %v31_v53 = vld [vmem:[%s1463_s0 + $0x60] sm:$0xff]  ;;  %v32_v54 = vld [vmem:[%s1463_s0 + $0x68] sm:$0xff]  ;;  %s866_s8 = sshll.u32 %s1193_s7, 4  ;;  %s867_s8 = int_to_ptr.vmem [resolvable:$true] %s866_s8 }
  0x1f   :  { %v57_v55 = vld [vmem:[%s1464_s1 + $0x70] sm:$0xff]  ;;  %v58_v56 = vld [vmem:[%s1464_s1 + $0x78] sm:$0xff]  ;;  %v40_v57 = vpack.c.bf16 %v30_v52, %v29_v51  ;;  %v41_v58 = vpack.c.bf16 %v32_v54, %v31_v53  ;;  %v1157_v0 = vld [vmem:[%s1465_s2 + $0x80] sm:$0xff]   ;;  %s1167_s9 = scalar_lea.vmem %s867_s8, 16  ;;  %p1172_p1 = scmp.lt.s32.totalorder %s867_s8, %s867_s8 }
  0x20   :  { %1045 = vmatpush3.bf16.msra.mxu1 %v1154_v45  ;;  %v66_v59 = vpack.c.bf16 %v58_v56, %v57_v55  ;;  %v33_v60 = vld [vmem:[%s1463_s0 + $0x70] sm:$0xff]  ;;  %v34_v61 = vld [vmem:[%s1463_s0 + $0x78] sm:$0xff]  ;;  %v1158_v1 = vld [vmem:[%s1465_s2 + $0x88] sm:$0xff]   ;;  %p1168_p0 = scmp.ne.s32.totalorder %s867_s8, %s1167_s9  ;;  %s1171_s0 = scalar_lea.vmem %s867_s8, 32 }
  0x21   :  { %1046 = vmatprep.subr.bf16.mxu1 %v1155_v50  ;;  %v42_v62 = vpack.c.bf16 %v34_v61, %v33_v60  ;;  %v1156_v63 = vld [vmem:[%s1465_s2 + $0x78] sm:$0xff]   ;;  %v1159_v2 = vld [vmem:[%s1465_s2 + $0x90] sm:$0xff]   ;;  %v1391_v7 = vld [vmem:[%s1466_s3] ss:$0 sm:$0xff]  ;;  %p1173_p2 = scmp.lt.s32.totalorder %s1171_s0, %s1167_s9 }
  0x22   :  { %1027 = vmatmul.mubr.msk.bf16.gmra.mrb[4].mxu0 %vm307_vm1, %v38_v46  ;;  %1003 = vmatmul.mubr.msk.bf16.gmra.mrb[8].mxu1 %vm149_vm0, %v64_v48  ;;  %v1160_v40 = vld [vmem:[%s1465_s2 + $0x98] sm:$0xff]  }
  0x23   :  { %1030 = vmatprep.mubr.msk.bf16.mxu0 %vm307_vm1, %v39_v47  ;;  %1006 = vmatprep.mubr.msk.bf16.mxu1 %vm149_vm0, %v65_v49  ;;  %p1174_p3 = por %p1173_p2, %p1172_p1 }
  0x24   :  { %1047 = vmatpush3.bf16.msra.mxu1 %v1155_v50  ;;  %v1161_v50 = vld [vmem:[%s1465_s2 + $0xa0] sm:$0xff]  }
  0x25   :  { %1048 = vmatprep.subr.bf16.mxu1 %v1156_v63  ;;  %p1175_p4 = pnand %p1174_p3, %p1168_p0 }
  0x28   :  { %1049 = vmatpush3.bf16.msra.mxu1 %v1156_v63 }
  0x29   :  { %1050 = vmatprep.subr.bf16.mxu1 %v1157_v0 }
  0x2a   :  { %1031 = vmatmul.mubr.msk.bf16.gmra.mrb[8].mxu0 %vm307_vm1, %v40_v57  ;;  %1007 = vmatmul.mubr.msk.bf16.gmra.mrb[12].mxu1 %vm149_vm0, %v66_v59 }
  0x2b   :  { %1034 = vmatprep.mubr.msk.bf16.mxu0 %vm307_vm1, %v41_v58 }
  0x2c   :  { %1051 = vmatpush3.bf16.msra.mxu1 %v1157_v0  ;;  %v1162_v0 = vld [vmem:[%s1465_s2 + $0xa8] sm:$0xff]  }
  0x2d   :  { %1052 = vmatprep.subr.bf16.mxu1 %v1158_v1 }
  0x30   :  { %1053 = vmatpush3.bf16.msra.mxu1 %v1158_v1 }
  0x31   :  { %1070 = vmatprep.subr.bf16.mxu1 %v1159_v2 }
  0x32   :  { %1035 = vmatmul.mubr.msk.bf16.gmra.mrb[12].mxu0 %vm307_vm1, %v42_v62 }
  0xe5   :  { %v996_v3 = vpop.f32.mrb[0].mxu1 }
  0xe6   :  { %v208_v4 = vpop.f32.mrb[1].mxu1 }
  0xe7   :  { %v997_v5 = vpop.f32.mrb[2].mxu1 }
  0xe8   :  { %v211_v6 = vpop.f32.mrb[3].mxu1 }
  0xed   :  { %v1024_v8 = vpop.f32.mrb[0].mxu0  ;;  %v1000_v13 = vpop.f32.mrb[4].mxu1 }
  0xee   :  { %v375_v9 = vadd.f32 %v1024_v8, %v996_v3  ;;  %v366_v10 = vpop.f32.mrb[1].mxu0  ;;  %v224_v17 = vpop.f32.mrb[5].mxu1 }
  0xef   :  { %v367_v11 = vadd.f32 %v366_v10, %v208_v4  ;;  %v1025_v12 = vpop.f32.mrb[2].mxu0  ;;  %v1001_v20 = vpop.f32.mrb[6].mxu1 }
  0xf0   :  { %v435_v14 = vadd.f32 %v1391_v7, %v375_v9  ;;  %v378_v15 = vadd.f32 %v1025_v12, %v997_v5  ;;  %v369_v16 = vpop.f32.mrb[3].mxu0  ;;  %v227_v22 = vpop.f32.mrb[7].mxu1 }
  0xf1   :  { %v433_v18 = vadd.f32 %v1391_v7, %v367_v11  ;;  %v370_v19 = vadd.f32 %v369_v16, %v211_v6  ;;  %v1163_v11 = vld [vmem:[%s1465_s2 + $0xb0] sm:$0xff]  }
  0xf2   :  { %v436_v21 = vadd.f32 %v1391_v7, %v378_v15  ;;  %v451_v24 = vmax.f32 %v435_v14, 0.0 }
  0xf3   :  { %v434_v23 = vadd.f32 %v1391_v7, %v370_v19  ;;  %v449_v26 = vmax.f32 %v433_v18, 0.0 }
  0xf4   :  { %v452_v25 = vmax.f32 %v436_v21, 0.0 }
  0xf5   :  { %v450_v27 = vmax.f32 %v434_v23, 0.0  ;;  %v1028_v28 = vpop.f32.mrb[4].mxu0  ;;  %v1004_v35 = vpop.f32.mrb[8].mxu1  ;;  %v1164_v23 = vld [vmem:[%s1465_s2 + $0xb8] sm:$0xff]  }
  0xf6   :  { %v466_v29 = vpack.c.bf16 %v452_v25, %v451_v24  ;;  %v391_v30 = vadd.f32 %v1028_v28, %v1000_v13  ;;  %v382_v31 = vpop.f32.mrb[5].mxu0  ;;  %v240_v39 = vpop.f32.mrb[9].mxu1 }
  0xf7   :  { %v383_v32 = vadd.f32 %v382_v31, %v224_v17  ;;  %v1029_v33 = vpop.f32.mrb[6].mxu0  ;;  %v465_v34 = vpack.c.bf16 %v450_v27, %v449_v26  ;;  %v1005_v43 = vpop.f32.mrb[10].mxu1 }
  0xf8   :  { %v439_v36 = vadd.f32 %v1391_v7, %v391_v30  ;;  %v394_v37 = vadd.f32 %v1029_v33, %v1001_v20  ;;  %v385_v38 = vpop.f32.mrb[7].mxu0  ;;  %v243_v46 = vpop.f32.mrb[11].mxu1 }
  0xf9   :  { %v437_v41 = vadd.f32 %v1391_v7, %v383_v32  ;;  %v386_v42 = vadd.f32 %v385_v38, %v227_v22  ;;  %1054 = vmatprep.mubr.bf16.mxu1 %v465_v34  ;;  %v1165_v34 = vld [vmem:[%s1465_s2 + $0xc0] sm:$0xff]  }
  0xfa   :  { %v455_v44 = vmax.f32 %v439_v36, 0.0  ;;  %v440_v45 = vadd.f32 %v1391_v7, %v394_v37  ;;  %1055 = vmatmul.mubr.bf16.vlgmr.msra.gmra.mrb[16].mxu1 %v466_v29 }
  0xfb   :  { %v453_v47 = vmax.f32 %v437_v41, 0.0  ;;  %v438_v48 = vadd.f32 %v1391_v7, %v386_v42  ;;  %1071 = vmatpush3.bf16.msra.mxu1 %v1159_v2 }
  0xfc   :  { %v456_v49 = vmax.f32 %v440_v45, 0.0  ;;  %1072 = vmatprep.subr.bf16.mxu1 %v1160_v40 }
  0xfd   :  { %v454_v51 = vmax.f32 %v438_v48, 0.0  ;;  %v1032_v52 = vpop.f32.mrb[8].mxu0  ;;  %v1008_v59 = vpop.f32.mrb[12].mxu1 }
  0xfe   :  { %v407_v53 = vadd.f32 %v1032_v52, %v1004_v35  ;;  %v468_v54 = vpack.c.bf16 %v456_v49, %v455_v44  ;;  %v398_v55 = vpop.f32.mrb[9].mxu0  ;;  %v256_v63 = vpop.f32.mrb[13].mxu1  ;;  %v1166_v35 = vld [vmem:[%s1465_s2 + $0xc8] sm:$0xff]  }
  0xff   :  { %v467_v56 = vpack.c.bf16 %v454_v51, %v453_v47  ;;  %v399_v57 = vadd.f32 %v398_v55, %v240_v39  ;;  %v1033_v58 = vpop.f32.mrb[10].mxu0  ;;  %1073 = vmatpush3.bf16.msra.mxu1 %v1160_v40  ;;  %v1009_v3 = vpop.f32.mrb[14].mxu1 }
 0x100   :  { %v443_v60 = vadd.f32 %v1391_v7, %v407_v53  ;;  %v410_v61 = vadd.f32 %v1033_v58, %v1005_v43  ;;  %v401_v62 = vpop.f32.mrb[11].mxu0  ;;  %1074 = vmatprep.subr.bf16.mxu1 %v1161_v50  ;;  %v259_v6 = vpop.f32.mrb[15].mxu1 }
 0x101   :  { %1058 = vmatprep.mubr.bf16.mxu1 %v467_v56  ;;  %v441_v1 = vadd.f32 %v1391_v7, %v399_v57  ;;  %v402_v2 = vadd.f32 %v401_v62, %v243_v46 }
 0x102   :  { %v459_v4 = vmax.f32 %v443_v60, 0.0  ;;  %1059 = vmatmul.mubr.bf16.gmra.mrb[20].mxu1 %v468_v54  ;;  %v444_v5 = vadd.f32 %v1391_v7, %v410_v61 }
 0x103   :  { %v457_v8 = vmax.f32 %v441_v1, 0.0  ;;  %v442_v9 = vadd.f32 %v1391_v7, %v402_v2  ;;  %1075 = vmatpush3.bf16.msra.mxu1 %v1161_v50 }
 0x104   :  { %v460_v10 = vmax.f32 %v444_v5, 0.0  ;;  %1076 = vmatprep.subr.bf16.mxu1 %v1162_v0 }
 0x105   :  { %v458_v12 = vmax.f32 %v442_v9, 0.0  ;;  %v1036_v13 = vpop.f32.mrb[12].mxu0 }
 0x106   :  { %v470_v14 = vpack.c.bf16 %v460_v10, %v459_v4  ;;  %v423_v15 = vadd.f32 %v1036_v13, %v1008_v59  ;;  %v414_v16 = vpop.f32.mrb[13].mxu0 }
 0x107   :  { %v469_v17 = vpack.c.bf16 %v458_v12, %v457_v8  ;;  %v415_v18 = vadd.f32 %v414_v16, %v256_v63  ;;  %v1037_v19 = vpop.f32.mrb[14].mxu0  ;;  %1077 = vmatpush3.bf16.msra.mxu1 %v1162_v0 }
 0x108   :  { %v447_v20 = vadd.f32 %v1391_v7, %v423_v15  ;;  %v426_v21 = vadd.f32 %v1037_v19, %v1009_v3  ;;  %v417_v22 = vpop.f32.mrb[15].mxu0  ;;  %1078 = vmatprep.subr.bf16.mxu1 %v1163_v11 }
 0x109   :  { %1062 = vmatprep.mubr.bf16.mxu1 %v469_v17  ;;  %v445_v24 = vadd.f32 %v1391_v7, %v415_v18  ;;  %v418_v25 = vadd.f32 %v417_v22, %v259_v6 }
 0x10a   :  { %1063 = vmatmul.mubr.bf16.gmra.mrb[24].mxu1 %v470_v14  ;;  %v463_v26 = vmax.f32 %v447_v20, 0.0  ;;  %v448_v27 = vadd.f32 %v1391_v7, %v426_v21 }
 0x10b   :  { %v461_v28 = vmax.f32 %v445_v24, 0.0  ;;  %v446_v29 = vadd.f32 %v1391_v7, %v418_v25  ;;  %1079 = vmatpush3.bf16.msra.mxu1 %v1163_v11  ;;  %v901_v7 = vld [vmem:[%s1466_s3 + $0x1] ss:$0 sm:$0xff] }
 0x10c   :  { %v464_v30 = vmax.f32 %v448_v27, 0.0  ;;  %1080 = vmatprep.subr.bf16.mxu1 %v1164_v23 }
 0x10d   :  { %v462_v31 = vmax.f32 %v446_v29, 0.0  ;;  %v1191_v29 = vmov 0.0  }
 0x10e   :  { %v472_v32 = vpack.c.bf16 %v464_v30, %v463_v26  ;;  %1102 = vmatprep.subr.bf16.mxu0 %v1191_v29  ;;  %1118 = vmatprep.mubr.msk.bf16.mxu0 %vm1192_vm2, %v1191_v29  ;;  %v910_v30 = vld [vmem:[%s1466_s3 + $0x2] ss:$0 sm:$0xff] }
 0x10f   :  { %v471_v33 = vpack.c.bf16 %v462_v31, %v461_v28  ;;  %1081 = vmatpush3.bf16.msra.mxu1 %v1164_v23 }
 0x110   :  { %1082 = vmatprep.subr.bf16.mxu1 %v1165_v34 }
 0x111   :  { %1066 = vmatprep.mubr.bf16.mxu1 %v471_v33 }
 0x112   :  { %1067 = vmatmul.mubr.bf16.gmra.mrb[28].mxu1 %v472_v32 }
 0x113   :  { %1083 = vmatpush3.bf16.msra.mxu1 %v1165_v34 }
 0x114   :  { %1084 = vmatprep.subr.bf16.mxu1 %v1166_v35 }
 0x117   :  { %1085 = vmatpush3.bf16.msra.mxu1 %v1166_v35 }
 0x1cd   :  { %v1056_v36 = vpop.f32.mrb[16].mxu1 }
 0x1ce   :  { %v568_v37 = vadd.f32 %v1056_v36, %v901_v7  ;;  %v559_v38 = vpop.f32.mrb[17].mxu1 }
 0x1cf   :  { %v560_v39 = vadd.f32 %v901_v7, %v559_v38  ;;  %v1057_v40 = vpop.f32.mrb[18].mxu1 }
 0x1d0   :  { %v571_v41 = vadd.f32 %v1057_v40, %v901_v7  ;;  %v562_v42 = vpop.f32.mrb[19].mxu1  ;;  %v624_v44 = vmax.f32 %v568_v37, 0.0 }
 0x1d1   :  { %v563_v43 = vadd.f32 %v901_v7, %v562_v42  ;;  %v622_v46 = vmax.f32 %v560_v39, 0.0 }
 0x1d2   :  { %v625_v45 = vmax.f32 %v571_v41, 0.0 }
 0x1d3   :  { %v623_v47 = vmax.f32 %v563_v43, 0.0 }
 0x1d4   :  { %v639_v48 = vpack.c.bf16 %v625_v45, %v624_v44 }
 0x1d5   :  { %v638_v49 = vpack.c.bf16 %v623_v47, %v622_v46  ;;  %v1060_v50 = vpop.f32.mrb[20].mxu1 }
 0x1d6   :  { %v584_v51 = vadd.f32 %v1060_v50, %v901_v7  ;;  %v575_v52 = vpop.f32.mrb[21].mxu1 }
 0x1d7   :  { %v576_v53 = vadd.f32 %v901_v7, %v575_v52  ;;  %v1061_v54 = vpop.f32.mrb[22].mxu1  ;;  %1086 = vmatprep.mubr.bf16.mxu1 %v638_v49 }
 0x1d8   :  { %v628_v55 = vmax.f32 %v584_v51, 0.0  ;;  %v587_v56 = vadd.f32 %v1061_v54, %v901_v7  ;;  %v578_v57 = vpop.f32.mrb[23].mxu1  ;;  %1087 = vmatmul.mubr.bf16.vlgmr.msra.gmra.mrb[32].mxu1 %v639_v48 }
 0x1d9   :  { %v626_v58 = vmax.f32 %v576_v53, 0.0  ;;  %v579_v59 = vadd.f32 %v901_v7, %v578_v57 }
 0x1da   :  { %v629_v60 = vmax.f32 %v587_v56, 0.0 }
 0x1db   :  { %v627_v61 = vmax.f32 %v579_v59, 0.0 }
 0x1dc   :  { %v641_v62 = vpack.c.bf16 %v629_v60, %v628_v55 }
 0x1dd   :  { %v640_v63 = vpack.c.bf16 %v627_v61, %v626_v58  ;;  %v1064_v0 = vpop.f32.mrb[24].mxu1 }
 0x1de   :  { %v600_v1 = vadd.f32 %v1064_v0, %v901_v7  ;;  %v591_v2 = vpop.f32.mrb[25].mxu1 }
 0x1df   :  { %1090 = vmatprep.mubr.bf16.mxu1 %v640_v63  ;;  %v592_v3 = vadd.f32 %v901_v7, %v591_v2  ;;  %v1065_v4 = vpop.f32.mrb[26].mxu1 }
 0x1e0   :  { %1091 = vmatmul.mubr.bf16.gmra.mrb[36].mxu1 %v641_v62  ;;  %v632_v5 = vmax.f32 %v600_v1, 0.0  ;;  %v603_v6 = vadd.f32 %v1065_v4, %v901_v7  ;;  %v594_v8 = vpop.f32.mrb[27].mxu1 }
 0x1e1   :  { %v630_v9 = vmax.f32 %v592_v3, 0.0  ;;  %v595_v10 = vadd.f32 %v901_v7, %v594_v8 }
 0x1e2   :  { %v633_v11 = vmax.f32 %v603_v6, 0.0 }
 0x1e3   :  { %v631_v12 = vmax.f32 %v595_v10, 0.0 }
 0x1e4   :  { %v643_v13 = vpack.c.bf16 %v633_v11, %v632_v5 }
 0x1e5   :  { %v642_v14 = vpack.c.bf16 %v631_v12, %v630_v9  ;;  %v1068_v15 = vpop.f32.mrb[28].mxu1 }
 0x1e6   :  { %v616_v16 = vadd.f32 %v1068_v15, %v901_v7  ;;  %v607_v17 = vpop.f32.mrb[29].mxu1 }
 0x1e7   :  { %1094 = vmatprep.mubr.bf16.mxu1 %v642_v14  ;;  %v608_v18 = vadd.f32 %v901_v7, %v607_v17  ;;  %v1069_v19 = vpop.f32.mrb[30].mxu1 }
 0x1e8   :  { %1095 = vmatmul.mubr.bf16.gmra.mrb[40].mxu1 %v643_v13  ;;  %v636_v20 = vmax.f32 %v616_v16, 0.0  ;;  %v619_v21 = vadd.f32 %v1069_v19, %v901_v7  ;;  %v610_v22 = vpop.f32.mrb[31].mxu1 }
 0x1e9   :  { %v634_v23 = vmax.f32 %v608_v18, 0.0  ;;  %v611_v24 = vadd.f32 %v901_v7, %v610_v22 }
 0x1ea   :  { %v637_v25 = vmax.f32 %v619_v21, 0.0 }
 0x1eb   :  { %v635_v26 = vmax.f32 %v611_v24, 0.0 }
 0x1ec   :  { %v645_v27 = vpack.c.bf16 %v637_v25, %v636_v20  ;;  %v124_v25 = vld [vmem:[%s1466_s3 + $0x4] sm:$0x1] }
 0x1ed   :  { %v644_v28 = vpack.c.bf16 %v635_v26, %v634_v23  ;;  %v122_v23 = vld [vmem:[%s1466_s3 + $0x3] sm:$0x1] }
 0x1ee   :  { %v123_v24 = vpack.c.bf16 %v122_v23, %v122_v23 }
 0x1ef   :  { %1098 = vmatprep.mubr.bf16.mxu1 %v644_v28 }
 0x1f0   :  { %1099 = vmatmul.mubr.bf16.gmra.mrb[44].mxu1 %v645_v27 }
 0x2ab   :  { %v1088_v31 = vpop.f32.mrb[32].mxu1 }
 0x2ac   :  { %v741_v32 = vadd.f32 %v1088_v31, %v910_v30  ;;  %v732_v33 = vpop.f32.mrb[33].mxu1 }
 0x2ad   :  { %v733_v34 = vadd.f32 %v910_v30, %v732_v33  ;;  %v1089_v35 = vpop.f32.mrb[34].mxu1 }
 0x2ae   :  { %v744_v7 = vadd.f32 %v1089_v35, %v910_v30  ;;  %v735_v36 = vpop.f32.mrb[35].mxu1  ;;  %v797_v38 = vmax.f32 %v741_v32, 0.0 }
 0x2af   :  { %v736_v37 = vadd.f32 %v910_v30, %v735_v36  ;;  %v795_v40 = vmax.f32 %v733_v34, 0.0 }
 0x2b0   :  { %v798_v39 = vmax.f32 %v744_v7, 0.0 }
 0x2b1   :  { %v796_v41 = vmax.f32 %v736_v37, 0.0 }
 0x2b2   :  { %v812_v42 = vpack.c.bf16 %v798_v39, %v797_v38 }
 0x2b3   :  { %v811_v43 = vpack.c.bf16 %v796_v41, %v795_v40  ;;  %v1092_v44 = vpop.f32.mrb[36].mxu1 }
 0x2b4   :  { %v757_v45 = vadd.f32 %v1092_v44, %v910_v30  ;;  %v748_v46 = vpop.f32.mrb[37].mxu1 }
 0x2b5   :  { %v749_v47 = vadd.f32 %v910_v30, %v748_v46  ;;  %v1093_v48 = vpop.f32.mrb[38].mxu1  ;;  %1103 = vmatpush3.bf16.xpose.msra.mxu0 %v811_v43 }
 0x2b6   :  { %v760_v49 = vadd.f32 %v1093_v48, %v910_v30  ;;  %v751_v50 = vpop.f32.mrb[39].mxu1  ;;  %1104 = vmatprep.subr.bf16.mxu0 %v1191_v29  ;;  %v801_v52 = vmax.f32 %v757_v45, 0.0 }
 0x2b7   :  { %v752_v51 = vadd.f32 %v910_v30, %v751_v50  ;;  %v799_v54 = vmax.f32 %v749_v47, 0.0 }
 0x2b8   :  { %v802_v53 = vmax.f32 %v760_v49, 0.0 }
 0x2b9   :  { %v800_v55 = vmax.f32 %v752_v51, 0.0 }
 0x2ba   :  { %v814_v56 = vpack.c.bf16 %v802_v53, %v801_v52 }
 0x2bb   :  { %v813_v57 = vpack.c.bf16 %v800_v55, %v799_v54  ;;  %v1096_v58 = vpop.f32.mrb[40].mxu1 }
 0x2bc   :  { %v773_v59 = vadd.f32 %v1096_v58, %v910_v30  ;;  %v764_v60 = vpop.f32.mrb[41].mxu1 }
 0x2bd   :  { %1105 = vmatpush3.bf16.xpose.msra.mxu0 %v812_v42  ;;  %v765_v61 = vadd.f32 %v910_v30, %v764_v60  ;;  %v1097_v62 = vpop.f32.mrb[42].mxu1 }
 0x2be   :  { %v805_v63 = vmax.f32 %v773_v59, 0.0  ;;  %v776_v0 = vadd.f32 %v1097_v62, %v910_v30  ;;  %v767_v1 = vpop.f32.mrb[43].mxu1  ;;  %1106 = vmatprep.subr.bf16.mxu0 %v1191_v29 }
 0x2bf   :  { %v803_v2 = vmax.f32 %v765_v61, 0.0  ;;  %v768_v3 = vadd.f32 %v910_v30, %v767_v1 }
 0x2c0   :  { %v806_v4 = vmax.f32 %v776_v0, 0.0 }
 0x2c1   :  { %v804_v5 = vmax.f32 %v768_v3, 0.0 }
 0x2c2   :  { %v816_v6 = vpack.c.bf16 %v806_v4, %v805_v63 }
 0x2c3   :  { %v815_v8 = vpack.c.bf16 %v804_v5, %v803_v2  ;;  %v1100_v9 = vpop.f32.mrb[44].mxu1 }
 0x2c4   :  { %v789_v10 = vadd.f32 %v1100_v9, %v910_v30  ;;  %v780_v11 = vpop.f32.mrb[45].mxu1 }
 0x2c5   :  { %1107 = vmatpush3.bf16.xpose.msra.mxu0 %v813_v57  ;;  %v781_v12 = vadd.f32 %v910_v30, %v780_v11  ;;  %v1101_v13 = vpop.f32.mrb[46].mxu1 }
 0x2c6   :  { %1108 = vmatprep.subr.bf16.mxu0 %v1191_v29  ;;  %v809_v14 = vmax.f32 %v789_v10, 0.0  ;;  %v792_v15 = vadd.f32 %v1101_v13, %v910_v30  ;;  %v783_v16 = vpop.f32.mrb[47].mxu1 }
 0x2c7   :  { %v807_v17 = vmax.f32 %v781_v12, 0.0  ;;  %v784_v18 = vadd.f32 %v910_v30, %v783_v16 }
 0x2c8   :  { %v810_v19 = vmax.f32 %v792_v15, 0.0 }
 0x2c9   :  { %v808_v20 = vmax.f32 %v784_v18, 0.0 }
 0x2ca   :  { %v818_v21 = vpack.c.bf16 %v810_v19, %v809_v14 }
 0x2cb   :  { %v817_v22 = vpack.c.bf16 %v808_v20, %v807_v17 }
 0x2cd   :  { %1109 = vmatpush3.bf16.xpose.msra.mxu0 %v814_v56 }
 0x2ce   :  { %1110 = vmatprep.subr.bf16.mxu0 %v1191_v29 }
 0x2d5   :  { %1111 = vmatpush3.bf16.xpose.msra.mxu0 %v815_v8 }
 0x2d6   :  { %1112 = vmatprep.subr.bf16.mxu0 %v1191_v29 }
 0x2dd   :  { %1113 = vmatpush3.bf16.xpose.msra.mxu0 %v816_v6 }
 0x2de   :  { %1114 = vmatprep.subr.bf16.mxu0 %v1191_v29 }
 0x2e5   :  { %1115 = vmatpush3.bf16.xpose.msra.mxu0 %v817_v22 }
 0x2e6   :  { %1116 = vmatprep.subr.bf16.mxu0 %v1191_v29 }
 0x2ed   :  { %1117 = vmatpush3.bf16.xpose.msra.mxu0 %v818_v21 }
 0x2f4   :  { %1119 = vmatmul.mubr.bf16.vlgmr.msra.gmra.mrb[16].mxu0 %v123_v24 }
 0x3c7   :  { %v853_v26 = vpop.f32.mrb[16].mxu0 }
 0x3c8   :  { %v854_v27 = vadd.f32 %v853_v26, %v124_v25  ;;  %v1120_v28 = vpop.f32.mrb[17].mxu0 }
 0x3c9   :  { %v856_v30 = vpop.f32.mrb[18].mxu0 }
 0x3ca   :  { %859 = vst [vmem:[#allocation2] sm:$0x1] %v854_v27  ;;  %v1121_v29 = vpop.f32.mrb[19].mxu0 }
 0x3cb   :  { %1178 = shalt.err (!%p1175_p4)
}
 0x3cc   :  { %s1179_s3 = scalar_lea.hbm %s1467_s4, 16 }
 0x3cd   :  { %p1180_p5 = scmp.ne.s32.totalorder %s1467_s4, %s1179_s3  ;;  %p1183_p6 = scmp.lt.u32.totalorder %s1179_s3, %s1467_s4 }
 0x3cf   :  { %p1185_p7 = pnand %p1183_p6, %p1180_p5 }
 0x3d1   :  { %1188 = shalt.err (!%p1185_p7)
}
 0x3d2   :  { %869 = dma.vmem_to_hbm [thread:$0]  %s867_s8, 16, %s1467_s4, [#allocation3]  }
 0x3d3   :  { %1189 = dma.done.wait [#allocation3], 16  }
 0x3d4   :  { %1190 = vsyncadd [#allocation3], 4294967280 }
 0x3d5   :  { %873 = vsyncpa [#allocation3], 1 }

</bundles_post_ra>
